<compile_context>
chip_gen: v7x
topology: tpu7x:2x2x1
jax: 0.10.0
libtpu: 0.0.40
codegen_flags: <defaults>
</compile_context>

<pallas_src>
import functools
import math

import jax
import jax.numpy as jnp
from jax.experimental import pallas as pl
from jax.experimental.pallas import tpu as pltpu

LN_EPS = 1e-5  # nn.LayerNorm default

# Cached capability flag: whether BlockSpec(pipeline_mode=pl.Buffered(1)) lowers.
_SINGLE_BUFFER_WEIGHTS_OK = [True]


def _encoder_block_kernel(
    x_ref,
    wqkv_ref, bqkv_ref, wo_ref, bo_ref,
    ln1_g_ref, ln1_b_ref,
    w1_ref, b1_ref, w2_ref, b2_ref,
    ln2_g_ref, ln2_b_ref,
    out_ref,
    *, batch_tile: int, seq_len: int, embed_dim: int, num_heads: int,
    mxu_dtype, approx_recip: bool,
):
    Bt, S, E, H = batch_tile, seq_len, embed_dim, num_heads
    hd = E // H
    R = Bt * S  # fused row count for all dense projections

    # (Bt, S, E) -> (Bt*S, E): merges leading dims only (no lane relayout).
    x = x_ref[...].reshape(R, E).astype(jnp.float32)
    xm = x.astype(mxu_dtype)

    # ---- fused QKV projection (MXU, f32 accumulation) ------------------------
    # The 1/sqrt(hd) attention scale is pre-folded into the Q columns of
    # wqkv/bqkv in the wrapper, so no extra (R, E) multiply is needed here.
    qkv = (jnp.dot(xm, wqkv_ref[...], preferred_element_type=jnp.float32)
           + bqkv_ref[...])
    q = qkv[:, 0 * E:1 * E]
    k = qkv[:, 1 * E:2 * E]
    v = qkv[:, 2 * E:3 * E]

    # ---- attention: single head-major relayout per tensor, batched matmuls ---
    # One reshape/transpose per tensor (done in the narrow MXU dtype) instead of
    # 2*Bt*H lane-misaligned per-head slices + concatenates.
    def to_heads(t):
        t = t.astype(mxu_dtype).reshape(Bt, S, H, hd)
        t = jnp.transpose(t, (0, 2, 1, 3))          # (Bt, H, S, hd)
        return t.reshape(Bt * H, S, hd)

    qh = to_heads(q)
    kh = to_heads(k)
    vh = to_heads(v)

    s = jnp.einsum("bqd,bkd->bqk", qh, kh,
                   preferred_element_type=jnp.float32)          # (Bt*H, S, S)
    m = jnp.max(s, axis=-1, keepdims=True)
    p = jnp.exp(s - m)
    denom = jnp.sum(p, axis=-1, keepdims=True)
    attn = p * pl.reciprocal(denom, approx=approx_recip)        # softmax
    ctx_h = jnp.einsum("bqk,bkd->bqd", attn.astype(mxu_dtype), vh,
                       preferred_element_type=jnp.float32)      # (Bt*H, S, hd)
    ctx = jnp.transpose(ctx_h.reshape(Bt, H, S, hd), (0, 2, 1, 3)).reshape(R, E)

    mha = jnp.dot(ctx.astype(mxu_dtype), wo_ref[...],
                  preferred_element_type=jnp.float32) + bo_ref[...]

    # ---- residual + LayerNorm 1 (dropout1 = identity in eval) ----------------
    # Single-pass statistics: var = E[y^2] - mu^2 (one lane reduction fewer).
    y = x + mha
    mu = jnp.mean(y, axis=-1, keepdims=True)
    var = jnp.mean(y * y, axis=-1, keepdims=True) - mu * mu
    yn = (y - mu) * jax.lax.rsqrt(var + LN_EPS) * ln1_g_ref[...] + ln1_b_ref[...]

    # ---- position-wise feed-forward -------------------------------------------
    h1 = jnp.maximum(
        jnp.dot(yn.astype(mxu_dtype), w1_ref[...],
                preferred_element_type=jnp.float32) + b1_ref[...],
        0.0)
    ff = jnp.dot(h1.astype(mxu_dtype), w2_ref[...],
                 preferred_element_type=jnp.float32) + b2_ref[...]

    # ---- residual + LayerNorm 2 (dropout2 = identity in eval) ----------------
    z = yn + ff
    mu2 = jnp.mean(z, axis=-1, keepdims=True)
    var2 = jnp.mean(z * z, axis=-1, keepdims=True) - mu2 * mu2
    zn = (z - mu2) * jax.lax.rsqrt(var2 + LN_EPS) * ln2_g_ref[...] + ln2_b_ref[...]

    out_ref[...] = zn.reshape(Bt, S, E).astype(out_ref.dtype)


def encoder_block(x, params, *, num_heads: int, fast: bool = True):
    """x: (B, S, E) float32; params: dict of weights (see init_params).

    fast=True  -> bf16 MXU inputs / bf16 x DMA (f32 accumulation) + approx recip.
    fast=False -> strict f32 path (bitwise-close to the pure-JAX reference).
    """
    B, S, E = x.shape
    F = params["w1"].shape[1]
    H = num_heads
    hd = E // H
    mxu_dtype = jnp.bfloat16 if fast else jnp.float32
    scale = 1.0 / math.sqrt(hd)

    # ---- weight prep (trace-time, once) --------------------------------------
    # Fused QKV weight/bias; attention scale folded into the Q columns.
    wqkv = jnp.concatenate(
        [params["wq"] * scale, params["wk"], params["wv"]], axis=1).astype(mxu_dtype)
    bqkv = jnp.concatenate(
        [params["bq"] * scale, params["bk"], params["bv"]], axis=1).astype(jnp.float32)
    wo = params["wo"].astype(mxu_dtype)
    w1 = params["w1"].astype(mxu_dtype)
    w2 = params["w2"].astype(mxu_dtype)

    # x DMA'd in bf16 in fast mode (halves input HBM traffic / x tile VMEM);
    # upcast to f32 immediately inside the kernel. Output stays in x.dtype.
    x_in = x.astype(mxu_dtype) if fast else x

    # ---- batch-tile selection -------------------------------------------------
    # Fuse enough batch elements per grid step that the projection / FFN matmuls
    # see ~512 rows (fills the 256-wide v6e/v7x MXU; v5e's 128-wide MXU is full
    # well below that), but keep >= 2 grid steps when B >= 2 so both v7x
    # TensorCores get work under dimension_semantics=("parallel",).
    row_target = 512
    bt_cap = min(B, max(1, row_target // max(S, 1)), 8)
    if B >= 2:
        bt_cap = min(bt_cap, B // 2)
    bt_cap = max(1, bt_cap)
    Bt = max(d for d in range(1, bt_cap + 1) if B % d == 0)
    grid = (B // Bt,)
    R = Bt * S

    # ---- VMEM budget ----------------------------------------------------------
    bpe_w = jnp.dtype(mxu_dtype).itemsize
    bpe_x = jnp.dtype(x_in.dtype).itemsize
    weight_bytes = (4 * E * E + 2 * E * F) * bpe_w + (5 * E + F) * 4
    act_f32 = R * (10 * E + 2 * F) * 4                 # f32 working slabs
    act_mxu = R * (7 * E + F) * bpe_w                  # bf16 copies feeding the MXU
    score_bytes = Bt * H * S * S * (2 * 4 + bpe_w)     # scores + probs + bf16 probs
    io_bytes = 2 * Bt * S * E * (bpe_x + 4)            # double-buffered in/out tiles
    est = weight_bytes + act_f32 + act_mxu + score_bytes + io_bytes
    try:
        vmem_cap = int(pltpu.get_tpu_info().vmem_capacity_bytes)
    except Exception:
        vmem_cap = 64 * (1 << 20)                      # safe for v7x's smaller VMEM
    vmem_limit = int(min(max(int(1.5 * est), 32 * (1 << 20)), int(0.9 * vmem_cap)))

    kernel = functools.partial(
        _encoder_block_kernel,
        batch_tile=Bt, seq_len=S, embed_dim=E, num_heads=H,
        mxu_dtype=mxu_dtype, approx_recip=fast,
    )

    weight_args = (
        wqkv, bqkv, wo, params["bo"],
        params["ln1_g"], params["ln1_b"],
        w1, params["b1"], w2, params["b2"],
        params["ln2_g"], params["ln2_b"],
    )
    weight_shapes = tuple(a.shape for a in weight_args)

    def build_and_call(single_buffer_weights: bool):
        def wspec(shape):
            nd = len(shape)
            idx = lambda g, _nd=nd: (0,) * _nd
            if single_buffer_weights:
                # Grid-invariant inputs: one resident VMEM buffer is enough
                # (never re-fetched) -> halves resident weight VMEM vs. the
                # default double-buffering.
                return pl.BlockSpec(shape, idx, pipeline_mode=pl.Buffered(1))
            return pl.BlockSpec(shape, idx)

        in_specs = [pl.BlockSpec((Bt, S, E), lambda g: (g, 0, 0))]   # x
        in_specs += [wspec(s) for s in weight_shapes]

        call = pl.pallas_call(
            kernel,
            out_shape=jax.ShapeDtypeStruct((B, S, E), x.dtype),
            grid_spec=pltpu.PrefetchScalarGridSpec(
                num_scalar_prefetch=0,
                grid=grid,
                in_specs=in_specs,
                out_specs=pl.BlockSpec((Bt, S, E), lambda g: (g, 0, 0)),
            ),
            compiler_params=pltpu.CompilerParams(
                dimension_semantics=("parallel",),
                vmem_limit_bytes=vmem_limit,
            ),
        )
        return call(x_in, *weight_args)

    # No host sync here (caller decides when to block). The fallback is narrow
    # (API/lowering rejection of Buffered(1) only) and cached so it never
    # silently retries on genuine compile/VMEM errors or re-probes per call.
    if _SINGLE_BUFFER_WEIGHTS_OK[0]:
        try:
            return build_and_call(True)
        except (TypeError, NotImplementedError, pltpu.LoweringException):
            _SINGLE_BUFFER_WEIGHTS_OK[0] = False
    return build_and_call(False)


def init_params(key, embed_dim: int, ff_dim: int):
    ks = jax.random.split(key, 8)
    sd = 0.02
    E, F = embed_dim, ff_dim
    return {
        "wq": sd * jax.random.normal(ks[0], (E, E), jnp.float32),
        "wk": sd * jax.random.normal(ks[1], (E, E), jnp.float32),
        "wv": sd * jax.random.normal(ks[2], (E, E), jnp.float32),
        "wo": sd * jax.random.normal(ks[3], (E, E), jnp.float32),
        "bq": sd * jax.random.normal(ks[4], (1, E), jnp.float32),
        "bk": jnp.zeros((1, E), jnp.float32),
        "bv": jnp.zeros((1, E), jnp.float32),
        "bo": jnp.zeros((1, E), jnp.float32),
        "ln1_g": jnp.ones((1, E), jnp.float32),
        "ln1_b": jnp.zeros((1, E), jnp.float32),
        "w1": sd * jax.random.normal(ks[5], (E, F), jnp.float32),
        "b1": sd * jax.random.normal(ks[6], (1, F), jnp.float32),
        "w2": sd * jax.random.normal(ks[7], (F, E), jnp.float32),
        "b2": jnp.zeros((1, E), jnp.float32),
        "ln2_g": jnp.ones((1, E), jnp.float32),
        "ln2_b": jnp.zeros((1, E), jnp.float32),
    }


def _reference(x, p, num_heads):
    """Pure-JAX reference of the PyTorch forward (eval mode, no mask)."""
    B, S, E = x.shape
    hd = E // num_heads

    def ln(y, g, b):
        mu = y.mean(-1, keepdims=True)
        var = ((y - mu) ** 2).mean(-1, keepdims=True)
        return (y - mu) / jnp.sqrt(var + LN_EPS) * g + b

    q = x @ p["wq"] + p["bq"]
    k = x @ p["wk"] + p["bk"]
    v = x @ p["wv"] + p["bv"]
    q = q.reshape(B, S, num_heads, hd).transpose(0, 2, 1, 3)
    k = k.reshape(B, S, num_heads, hd).transpose(0, 2, 1, 3)
    v = v.reshape(B, S, num_heads, hd).transpose(0, 2, 1, 3)
    s = jnp.einsum("bhqd,bhkd->bhqk", q, k) / math.sqrt(hd)
    a = jax.nn.softmax(s, axis=-1)
    ctx = jnp.einsum("bhqk,bhkd->bhqd", a, v).transpose(0, 2, 1, 3).reshape(B, S, E)
    mha = ctx @ p["wo"] + p["bo"]
    y = ln(x + mha, p["ln1_g"], p["ln1_b"])
    ff = jnp.maximum(y @ p["w1"] + p["b1"], 0.0) @ p["w2"] + p["b2"]
    return ln(y + ff, p["ln2_g"], p["ln2_b"])


if __name__ == "__main__":
    # NOTE: test shapes are correctness-sized. For real perf runs use E, F that
    # are multiples of 128 (lane-dense loads/stores) and larger S.
    B, S, E, F, H = 2, 8, 32, 64, 4
    key = jax.random.PRNGKey(0)
    kx, kp = jax.random.split(key)
    x = jax.random.normal(kx, (B, S, E), jnp.float32)
    params = init_params(kp, E, F)

    ref = _reference(x, params, H)

    # Strict f32 path: must match the reference tightly.
    out_f32 = jax.block_until_ready(encoder_block(x, params, num_heads=H, fast=False))
    assert out_f32.shape == (B, S, E)
    err_f32 = float(jnp.max(jnp.abs(out_f32 - ref)))
    assert jnp.allclose(out_f32, ref, atol=1e-4, rtol=1e-4), err_f32

    # Fast path (bf16 MXU inputs + bf16 x DMA, f32 accumulation, approx recip).
    out_fast = jax.block_until_ready(encoder_block(x, params, num_heads=H, fast=True))
    err_fast = float(jnp.max(jnp.abs(out_fast - ref)))
    assert err_fast < 1e-1, err_fast

    print("KERNEL_OK")
</pallas_src>

<mosaic_0001>
module attributes {stable_mosaic.version = 11 : i64} {
  func.func @_encoder_block_kernel(%arg0: i32, %arg1: memref<1x8x32xf32, #tpu.memory_space<vmem>>, %arg2: memref<32x96xf32, #tpu.memory_space<vmem>>, %arg3: memref<1x96xf32, #tpu.memory_space<vmem>>, %arg4: memref<32x32xf32, #tpu.memory_space<vmem>>, %arg5: memref<1x32xf32, #tpu.memory_space<vmem>>, %arg6: memref<1x32xf32, #tpu.memory_space<vmem>>, %arg7: memref<1x32xf32, #tpu.memory_space<vmem>>, %arg8: memref<32x64xf32, #tpu.memory_space<vmem>>, %arg9: memref<1x64xf32, #tpu.memory_space<vmem>>, %arg10: memref<64x32xf32, #tpu.memory_space<vmem>>, %arg11: memref<1x32xf32, #tpu.memory_space<vmem>>, %arg12: memref<1x32xf32, #tpu.memory_space<vmem>>, %arg13: memref<1x32xf32, #tpu.memory_space<vmem>>, %arg14: memref<1x8x32xf32, #tpu.memory_space<vmem>>) attributes {dimension_semantics = [#tpu.dimension_semantics<parallel>], iteration_bounds = array<i64: 2>, scalar_prefetch = 0 : i64, scratch_operands = 0 : i64, tpu.core_type = #tpu.core_type<tc>, window_params = [{transform_indices = @transform_0, window_bounds = array<i64: 1, 8, 32>}, {pipeline_mode = #tpu.pipeline_mode<synchronous>, transform_indices = @transform_1, window_bounds = array<i64: 32, 96>}, {pipeline_mode = #tpu.pipeline_mode<synchronous>, transform_indices = @transform_2, window_bounds = array<i64: 1, 96>}, {pipeline_mode = #tpu.pipeline_mode<synchronous>, transform_indices = @transform_3, window_bounds = array<i64: 32, 32>}, {pipeline_mode = #tpu.pipeline_mode<synchronous>, transform_indices = @transform_4, window_bounds = array<i64: 1, 32>}, {pipeline_mode = #tpu.pipeline_mode<synchronous>, transform_indices = @transform_5, window_bounds = array<i64: 1, 32>}, {pipeline_mode = #tpu.pipeline_mode<synchronous>, transform_indices = @transform_6, window_bounds = array<i64: 1, 32>}, {pipeline_mode = #tpu.pipeline_mode<synchronous>, transform_indices = @transform_7, window_bounds = array<i64: 32, 64>}, {pipeline_mode = #tpu.pipeline_mode<synchronous>, transform_indices = @transform_8, window_bounds = array<i64: 1, 64>}, {pipeline_mode = #tpu.pipeline_mode<synchronous>, transform_indices = @transform_9, window_bounds = array<i64: 64, 32>}, {pipeline_mode = #tpu.pipeline_mode<synchronous>, transform_indices = @transform_10, window_bounds = array<i64: 1, 32>}, {pipeline_mode = #tpu.pipeline_mode<synchronous>, transform_indices = @transform_11, window_bounds = array<i64: 1, 32>}, {pipeline_mode = #tpu.pipeline_mode<synchronous>, transform_indices = @transform_12, window_bounds = array<i64: 1, 32>}, {transform_indices = @transform_13, window_bounds = array<i64: 1, 8, 32>}]} {
    %c0 = arith.constant 0 : index
    %c0_0 = arith.constant 0 : index
    %c0_1 = arith.constant 0 : index
    %0 = vector.load %arg1[%c0, %c0_0, %c0_1] : memref<1x8x32xf32, #tpu.memory_space<vmem>>, vector<1x8x32xf32>
    %1 = vector.shape_cast %0 : vector<1x8x32xf32> to vector<8x32xf32>
    %c0_2 = arith.constant 0 : index
    %c0_3 = arith.constant 0 : index
    %2 = vector.load %arg2[%c0_2, %c0_3] : memref<32x96xf32, #tpu.memory_space<vmem>>, vector<32x96xf32>
    %cst = arith.constant dense<0.000000e+00> : vector<8x96xf32>
    %3 = tpu.matmul %1, %2, %cst {dimension_numbers = #tpu.dot_dimension_numbers<[1], [0], [0], [1], [0, 0, 1, 1], [], []>} : vector<8x32xf32>, vector<32x96xf32>, vector<8x96xf32> -> vector<8x96xf32>
    %c0_4 = arith.constant 0 : index
    %c0_5 = arith.constant 0 : index
    %4 = vector.load %arg3[%c0_4, %c0_5] : memref<1x96xf32, #tpu.memory_space<vmem>>, vector<1x96xf32>
    %5 = vector.broadcast %4 : vector<1x96xf32> to vector<8x96xf32>
    %6 = arith.addf %3, %5 : vector<8x96xf32>
    %7 = vector.extract_strided_slice %6 {offsets = [0, 0], sizes = [8, 32], strides = [1, 1]} : vector<8x96xf32> to vector<8x32xf32>
    %8 = vector.extract_strided_slice %6 {offsets = [0, 32], sizes = [8, 32], strides = [1, 1]} : vector<8x96xf32> to vector<8x32xf32>
    %9 = vector.extract_strided_slice %6 {offsets = [0, 64], sizes = [8, 32], strides = [1, 1]} : vector<8x96xf32> to vector<8x32xf32>
    %10 = vector.shape_cast %7 : vector<8x32xf32> to vector<1x8x4x8xf32>
    %11 = tpu.transpose %10, [0, 2, 1, 3] : vector<1x8x4x8xf32> -> vector<1x4x8x8xf32>
    %12 = vector.shape_cast %11 : vector<1x4x8x8xf32> to vector<4x8x8xf32>
    %13 = vector.shape_cast %8 : vector<8x32xf32> to vector<1x8x4x8xf32>
    %14 = tpu.transpose %13, [0, 2, 1, 3] : vector<1x8x4x8xf32> -> vector<1x4x8x8xf32>
    %15 = vector.shape_cast %14 : vector<1x4x8x8xf32> to vector<4x8x8xf32>
    %16 = vector.shape_cast %9 : vector<8x32xf32> to vector<1x8x4x8xf32>
    %17 = tpu.transpose %16, [0, 2, 1, 3] : vector<1x8x4x8xf32> -> vector<1x4x8x8xf32>
    %18 = vector.shape_cast %17 : vector<1x4x8x8xf32> to vector<4x8x8xf32>
    "tpu.trace_start"() <{level = 10 : i32, message = "bqd,bkd->bqk"}> : () -> ()
    %cst_6 = arith.constant dense<0.000000e+00> : vector<4x8x8xf32>
    %19 = tpu.matmul %12, %15, %cst_6 {dimension_numbers = #tpu.dot_dimension_numbers<[2], [2], [1], [1], [0, 0, 0, 1, 1, 1], [0], [0]>} : vector<4x8x8xf32>, vector<4x8x8xf32>, vector<4x8x8xf32> -> vector<4x8x8xf32>
    "tpu.trace_stop"() : () -> ()
    %cst_7 = arith.constant dense<0xFF800000> : vector<4x8xf32>
    %20 = vector.multi_reduction <maximumf>, %19, %cst_7 [2] : vector<4x8x8xf32> to vector<4x8xf32>
    %21 = vector.shape_cast %20 : vector<4x8xf32> to vector<4x8x1xf32>
    %22 = vector.broadcast %21 : vector<4x8x1xf32> to vector<4x8x8xf32>
    %23 = arith.subf %19, %22 : vector<4x8x8xf32>
    %24 = math.exp %23 : vector<4x8x8xf32>
    %cst_8 = arith.constant dense<0.000000e+00> : vector<4x8xf32>
    %25 = vector.multi_reduction <add>, %24, %cst_8 [2] : vector<4x8x8xf32> to vector<4x8xf32>
    %26 = vector.shape_cast %25 : vector<4x8xf32> to vector<4x8x1xf32>
    %27 = tpu.reciprocal %26 : vector<4x8x1xf32> -> vector<4x8x1xf32>
    %28 = vector.broadcast %27 : vector<4x8x1xf32> to vector<4x8x8xf32>
    %29 = arith.mulf %24, %28 : vector<4x8x8xf32>
    "tpu.trace_start"() <{level = 10 : i32, message = "bqk,bkd->bqd"}> : () -> ()
    %cst_9 = arith.constant dense<0.000000e+00> : vector<4x8x8xf32>
    %30 = tpu.matmul %29, %18, %cst_9 {dimension_numbers = #tpu.dot_dimension_numbers<[2], [1], [1], [2], [0, 0, 0, 1, 1, 2], [0], [0]>} : vector<4x8x8xf32>, vector<4x8x8xf32>, vector<4x8x8xf32> -> vector<4x8x8xf32>
    "tpu.trace_stop"() : () -> ()
    %31 = vector.shape_cast %30 : vector<4x8x8xf32> to vector<1x4x8x8xf32>
    %32 = tpu.transpose %31, [0, 2, 1, 3] : vector<1x4x8x8xf32> -> vector<1x8x4x8xf32>
    %33 = vector.shape_cast %32 : vector<1x8x4x8xf32> to vector<8x32xf32>
    %c0_10 = arith.constant 0 : index
    %c0_11 = arith.constant 0 : index
    %34 = vector.load %arg4[%c0_10, %c0_11] : memref<32x32xf32, #tpu.memory_space<vmem>>, vector<32x32xf32>
    %cst_12 = arith.constant dense<0.000000e+00> : vector<8x32xf32>
    %35 = tpu.matmul %33, %34, %cst_12 {dimension_numbers = #tpu.dot_dimension_numbers<[1], [0], [0], [1], [0, 0, 1, 1], [], []>} : vector<8x32xf32>, vector<32x32xf32>, vector<8x32xf32> -> vector<8x32xf32>
    %c0_13 = arith.constant 0 : index
    %c0_14 = arith.constant 0 : index
    %36 = vector.load %arg5[%c0_13, %c0_14] : memref<1x32xf32, #tpu.memory_space<vmem>>, vector<1x32xf32>
    %37 = vector.broadcast %36 : vector<1x32xf32> to vector<8x32xf32>
    %38 = arith.addf %35, %37 : vector<8x32xf32>
    %39 = arith.addf %1, %38 : vector<8x32xf32>
    %cst_15 = arith.constant dense<0.000000e+00> : vector<8xf32>
    %40 = vector.multi_reduction <add>, %39, %cst_15 [1] : vector<8x32xf32> to vector<8xf32>
    %41 = vector.shape_cast %40 : vector<8xf32> to vector<8x1xf32>
    %cst_16 = arith.constant 3.200000e+01 : f32
    %42 = vector.broadcast %cst_16 : f32 to vector<8x1xf32>
    %43 = arith.divf %41, %42 : vector<8x1xf32>
    %44 = arith.mulf %39, %39 : vector<8x32xf32>
    %cst_17 = arith.constant dense<0.000000e+00> : vector<8xf32>
    %45 = vector.multi_reduction <add>, %44, %cst_17 [1] : vector<8x32xf32> to vector<8xf32>
    %46 = vector.shape_cast %45 : vector<8xf32> to vector<8x1xf32>
    %cst_18 = arith.constant 3.200000e+01 : f32
    %47 = vector.broadcast %cst_18 : f32 to vector<8x1xf32>
    %48 = arith.divf %46, %47 : vector<8x1xf32>
    %49 = arith.mulf %43, %43 : vector<8x1xf32>
    %50 = arith.subf %48, %49 : vector<8x1xf32>
    %51 = vector.broadcast %43 : vector<8x1xf32> to vector<8x32xf32>
    %52 = arith.subf %39, %51 : vector<8x32xf32>
    %cst_19 = arith.constant 9.99999974E-6 : f32
    %53 = vector.broadcast %cst_19 : f32 to vector<8x1xf32>
    %54 = arith.addf %50, %53 : vector<8x1xf32>
    %55 = math.rsqrt %54 : vector<8x1xf32>
    %56 = vector.broadcast %55 : vector<8x1xf32> to vector<8x32xf32>
    %57 = arith.mulf %52, %56 : vector<8x32xf32>
    %c0_20 = arith.constant 0 : index
    %c0_21 = arith.constant 0 : index
    %58 = vector.load %arg6[%c0_20, %c0_21] : memref<1x32xf32, #tpu.memory_space<vmem>>, vector<1x32xf32>
    %59 = vector.broadcast %58 : vector<1x32xf32> to vector<8x32xf32>
    %60 = arith.mulf %57, %59 : vector<8x32xf32>
    %c0_22 = arith.constant 0 : index
    %c0_23 = arith.constant 0 : index
    %61 = vector.load %arg7[%c0_22, %c0_23] : memref<1x32xf32, #tpu.memory_space<vmem>>, vector<1x32xf32>
    %62 = vector.broadcast %61 : vector<1x32xf32> to vector<8x32xf32>
    %63 = arith.addf %60, %62 : vector<8x32xf32>
    %c0_24 = arith.constant 0 : index
    %c0_25 = arith.constant 0 : index
    %64 = vector.load %arg8[%c0_24, %c0_25] : memref<32x64xf32, #tpu.memory_space<vmem>>, vector<32x64xf32>
    %cst_26 = arith.constant dense<0.000000e+00> : vector<8x64xf32>
    %65 = tpu.matmul %63, %64, %cst_26 {dimension_numbers = #tpu.dot_dimension_numbers<[1], [0], [0], [1], [0, 0, 1, 1], [], []>} : vector<8x32xf32>, vector<32x64xf32>, vector<8x64xf32> -> vector<8x64xf32>
    %c0_27 = arith.constant 0 : index
    %c0_28 = arith.constant 0 : index
    %66 = vector.load %arg9[%c0_27, %c0_28] : memref<1x64xf32, #tpu.memory_space<vmem>>, vector<1x64xf32>
    %67 = vector.broadcast %66 : vector<1x64xf32> to vector<8x64xf32>
    %68 = arith.addf %65, %67 : vector<8x64xf32>
    %cst_29 = arith.constant 0.000000e+00 : f32
    %69 = vector.broadcast %cst_29 : f32 to vector<8x64xf32>
    %70 = arith.maximumf %68, %69 : vector<8x64xf32>
    %c0_30 = arith.constant 0 : index
    %c0_31 = arith.constant 0 : index
    %71 = vector.load %arg10[%c0_30, %c0_31] : memref<64x32xf32, #tpu.memory_space<vmem>>, vector<64x32xf32>
    %cst_32 = arith.constant dense<0.000000e+00> : vector<8x32xf32>
    %72 = tpu.matmul %70, %71, %cst_32 {dimension_numbers = #tpu.dot_dimension_numbers<[1], [0], [0], [1], [0, 0, 1, 1], [], []>} : vector<8x64xf32>, vector<64x32xf32>, vector<8x32xf32> -> vector<8x32xf32>
    %c0_33 = arith.constant 0 : index
    %c0_34 = arith.constant 0 : index
    %73 = vector.load %arg11[%c0_33, %c0_34] : memref<1x32xf32, #tpu.memory_space<vmem>>, vector<1x32xf32>
    %74 = vector.broadcast %73 : vector<1x32xf32> to vector<8x32xf32>
    %75 = arith.addf %72, %74 : vector<8x32xf32>
    %76 = arith.addf %63, %75 : vector<8x32xf32>
    %cst_35 = arith.constant dense<0.000000e+00> : vector<8xf32>
    %77 = vector.multi_reduction <add>, %76, %cst_35 [1] : vector<8x32xf32> to vector<8xf32>
    %78 = vector.shape_cast %77 : vector<8xf32> to vector<8x1xf32>
    %cst_36 = arith.constant 3.200000e+01 : f32
    %79 = vector.broadcast %cst_36 : f32 to vector<8x1xf32>
    %80 = arith.divf %78, %79 : vector<8x1xf32>
    %81 = arith.mulf %76, %76 : vector<8x32xf32>
    %cst_37 = arith.constant dense<0.000000e+00> : vector<8xf32>
    %82 = vector.multi_reduction <add>, %81, %cst_37 [1] : vector<8x32xf32> to vector<8xf32>
    %83 = vector.shape_cast %82 : vector<8xf32> to vector<8x1xf32>
    %cst_38 = arith.constant 3.200000e+01 : f32
    %84 = vector.broadcast %cst_38 : f32 to vector<8x1xf32>
    %85 = arith.divf %83, %84 : vector<8x1xf32>
    %86 = arith.mulf %80, %80 : vector<8x1xf32>
    %87 = arith.subf %85, %86 : vector<8x1xf32>
    %88 = vector.broadcast %80 : vector<8x1xf32> to vector<8x32xf32>
    %89 = arith.subf %76, %88 : vector<8x32xf32>
    %cst_39 = arith.constant 9.99999974E-6 : f32
    %90 = vector.broadcast %cst_39 : f32 to vector<8x1xf32>
    %91 = arith.addf %87, %90 : vector<8x1xf32>
    %92 = math.rsqrt %91 : vector<8x1xf32>
    %93 = vector.broadcast %92 : vector<8x1xf32> to vector<8x32xf32>
    %94 = arith.mulf %89, %93 : vector<8x32xf32>
    %c0_40 = arith.constant 0 : index
    %c0_41 = arith.constant 0 : index
    %95 = vector.load %arg12[%c0_40, %c0_41] : memref<1x32xf32, #tpu.memory_space<vmem>>, vector<1x32xf32>
    %96 = vector.broadcast %95 : vector<1x32xf32> to vector<8x32xf32>
    %97 = arith.mulf %94, %96 : vector<8x32xf32>
    %c0_42 = arith.constant 0 : index
    %c0_43 = arith.constant 0 : index
    %98 = vector.load %arg13[%c0_42, %c0_43] : memref<1x32xf32, #tpu.memory_space<vmem>>, vector<1x32xf32>
    %99 = vector.broadcast %98 : vector<1x32xf32> to vector<8x32xf32>
    %100 = arith.addf %97, %99 : vector<8x32xf32>
    %101 = vector.shape_cast %100 : vector<8x32xf32> to vector<1x8x32xf32>
    %c0_44 = arith.constant 0 : index
    %c0_45 = arith.constant 0 : index
    %c0_46 = arith.constant 0 : index
    %102 = vector.load %arg14[%c0_44, %c0_45, %c0_46] : memref<1x8x32xf32, #tpu.memory_space<vmem>>, vector<1x8x32xf32>
    tpu.vector_store %arg14[%c0_44, %c0_45, %c0_46], %101 {strides = array<i32>} : memref<1x8x32xf32, #tpu.memory_space<vmem>>, vector<1x8x32xf32>,
    return
  }
  func.func @transform_0(%arg0: i32) -> (i32, i32, i32) {
    %c0_i32 = arith.constant 0 : i32
    %c0_i32_0 = arith.constant 0 : i32
    %c0_i32_1 = arith.constant 0 : i32
    return %arg0, %c0_i32, %c0_i32_0 : i32, i32, i32
  }
  func.func @transform_1(%arg0: i32) -> (i32, i32) {
    %c0_i32 = arith.constant 0 : i32
    %c0_i32_0 = arith.constant 0 : i32
    %c0_i32_1 = arith.constant 0 : i32
    return %c0_i32, %c0_i32_0 : i32, i32
  }
  func.func @transform_2(%arg0: i32) -> (i32, i32) {
    %c0_i32 = arith.constant 0 : i32
    %c0_i32_0 = arith.constant 0 : i32
    %c0_i32_1 = arith.constant 0 : i32
    return %c0_i32, %c0_i32_0 : i32, i32
  }
  func.func @transform_3(%arg0: i32) -> (i32, i32) {
    %c0_i32 = arith.constant 0 : i32
    %c0_i32_0 = arith.constant 0 : i32
    %c0_i32_1 = arith.constant 0 : i32
    return %c0_i32, %c0_i32_0 : i32, i32
  }
  func.func @transform_4(%arg0: i32) -> (i32, i32) {
    %c0_i32 = arith.constant 0 : i32
    %c0_i32_0 = arith.constant 0 : i32
    %c0_i32_1 = arith.constant 0 : i32
    return %c0_i32, %c0_i32_0 : i32, i32
  }
  func.func @transform_5(%arg0: i32) -> (i32, i32) {
    %c0_i32 = arith.constant 0 : i32
    %c0_i32_0 = arith.constant 0 : i32
    %c0_i32_1 = arith.constant 0 : i32
    return %c0_i32, %c0_i32_0 : i32, i32
  }
  func.func @transform_6(%arg0: i32) -> (i32, i32) {
    %c0_i32 = arith.constant 0 : i32
    %c0_i32_0 = arith.constant 0 : i32
    %c0_i32_1 = arith.constant 0 : i32
    return %c0_i32, %c0_i32_0 : i32, i32
  }
  func.func @transform_7(%arg0: i32) -> (i32, i32) {
    %c0_i32 = arith.constant 0 : i32
    %c0_i32_0 = arith.constant 0 : i32
    %c0_i32_1 = arith.constant 0 : i32
    return %c0_i32, %c0_i32_0 : i32, i32
  }
  func.func @transform_8(%arg0: i32) -> (i32, i32) {
    %c0_i32 = arith.constant 0 : i32
    %c0_i32_0 = arith.constant 0 : i32
    %c0_i32_1 = arith.constant 0 : i32
    return %c0_i32, %c0_i32_0 : i32, i32
  }
  func.func @transform_9(%arg0: i32) -> (i32, i32) {
    %c0_i32 = arith.constant 0 : i32
    %c0_i32_0 = arith.constant 0 : i32
    %c0_i32_1 = arith.constant 0 : i32
    return %c0_i32, %c0_i32_0 : i32, i32
  }
  func.func @transform_10(%arg0: i32) -> (i32, i32) {
    %c0_i32 = arith.constant 0 : i32
    %c0_i32_0 = arith.constant 0 : i32
    %c0_i32_1 = arith.constant 0 : i32
    return %c0_i32, %c0_i32_0 : i32, i32
  }
  func.func @transform_11(%arg0: i32) -> (i32, i32) {
    %c0_i32 = arith.constant 0 : i32
    %c0_i32_0 = arith.constant 0 : i32
    %c0_i32_1 = arith.constant 0 : i32
    return %c0_i32, %c0_i32_0 : i32, i32
  }
  func.func @transform_12(%arg0: i32) -> (i32, i32) {
    %c0_i32 = arith.constant 0 : i32
    %c0_i32_0 = arith.constant 0 : i32
    %c0_i32_1 = arith.constant 0 : i32
    return %c0_i32, %c0_i32_0 : i32, i32
  }
  func.func @transform_13(%arg0: i32) -> (i32, i32, i32) {
    %c0_i32 = arith.constant 0 : i32
    %c0_i32_0 = arith.constant 0 : i32
    %c0_i32_1 = arith.constant 0 : i32
    return %arg0, %c0_i32, %c0_i32_0 : i32, i32, i32
  }
}

</mosaic_0001>

<bundles_post_ra>
// kernel: tpu_custom_call.1
= control target key start
LH: loop header
LB: loop body
LE: loop exit
PB: predicated region body
PF: predicated region fallthrough
CT: control target
= control target key end

     0   :  { %s3371_s0 = inlined_call_operand.hbm [shape: f32[2,8,32], index: 0, kind: input, shape index: {}]   ;;  %s3372_s1 = inlined_call_operand.vmem [shape: f32[32,96], index: 1, kind: input, shape index: {}]   ;;  %s3373_s2 = inlined_call_operand.vmem [shape: f32[1,96], index: 2, kind: input, shape index: {}]   ;;  %s3374_s3 = inlined_call_operand.vmem [shape: f32[32,32], index: 3, kind: input, shape index: {}]   ;;  %s3375_s4 = inlined_call_operand.vmem [shape: f32[1,32], index: 4, kind: input, shape index: {}]   ;;  %s3376_s5 = inlined_call_operand.hbm [shape: f32[1,32], index: 5, kind: input, shape index: {}]   ;;  %s3377_s6 = inlined_call_operand.hbm [shape: f32[1,32], index: 6, kind: input, shape index: {}]   ;;  %s3378_s7 = inlined_call_operand.vmem [shape: f32[32,64], index: 7, kind: input, shape index: {}]   ;;  %s3379_s8 = inlined_call_operand.hbm [shape: f32[1,64], index: 8, kind: input, shape index: {}]   ;;  %s3380_s9 = inlined_call_operand.vmem [shape: f32[64,32], index: 9, kind: input, shape index: {}]   ;;  %s3381_s10 = inlined_call_operand.vmem [shape: f32[1,32], index: 10, kind: input, shape index: {}]   ;;  %s3382_s11 = inlined_call_operand.vmem [shape: f32[1,32], index: 11, kind: input, shape index: {}]   ;;  %s3383_s12 = inlined_call_operand.vmem [shape: f32[1,32], index: 12, kind: input, shape index: {}]   ;;  %s3384_s13 = inlined_call_operand.hbm [shape: f32[2,8,32], index: 13, kind: output, shape index: {}]  }
   0x1   :  { %3391 = sst [smem:[#allocation17_spill]] %s3371_s0 }
   0x2   :  { %3392 = sst [smem:[#allocation18_spill]] %s3372_s1 }
   0x3   :  { %3393 = sst [smem:[#allocation19_spill]] %s3382_s11 }
   0x4   :  { %3394 = sst [smem:[#allocation20_spill]] %s3383_s12 }
   0x5   :  { %3395 = sst [smem:[#allocation21_spill]] %s3384_s13 }
   0x6   :  { %18 = vsyncpa [#allocation3], 0 }
   0x7   :  { %20 = vsyncpa [#allocation3 + $0x1], 0 }
   0x8   :  { %21 = vsyncpa [#allocation6], 0 }
   0x9   :  { %22 = vsyncpa [#allocation9], 0 }
   0xa   :  { %23 = vsyncpa [#allocation4], 0 }
   0xb   :  { %25 = vsyncpa [#allocation4 + $0x1], 0  ;;  %s2853_s25 = smov 0   ;;  %s2855_s26 = smov 0  }
   0xc   :  { %s2857_s27 = smov 0   ;;  %s2859_s28 = smov 0  }
   0xd LB: > { %3396 = sst [smem:[#allocation15_spill]] %s2751_s25  ;;  %s2874_s29 = sadd.s32 4294967295, %s2763_s28   ;;  %s2763_s28 = sphi %s2859_s28, %s3424_s28   ;;  %s2759_s27 = sphi %s2857_s27, %s3423_s27   ;;  %s2755_s26 = sphi %s2855_s26, %s3422_s26   ;;  %s2751_s25 = sphi %s2853_s25, %s3421_s25  }
   0xe   : > { %s2253_s30 = sadd.s32 4294967294, %s2763_s28   ;;  %p51_p0 = scmp.ne.s32.totalorder %s2755_s26, %s2751_s25 }
   0xf   : > { %p3388_p1 = scmp.eq.s32.totalorder %s2874_s29, 0  ;;  %p333_p3 = scmp.eq.s32.totalorder %s2253_s30, 1 }
  0x10   : > { %p2254_p5 = scmp.ge.s32.totalorder %s2763_s28, 1  ;;  %p340_p7 = scmp.lt.s32.totalorder %s2763_s28, 3 }
  0x11   : > { %p2883_p4 = por %p3388_p1, %p51_p0  ;;  %p2888_p6 = por %p333_p3, %p51_p0 }
  0x12   : > { %p2893_p8 = pnand %p2254_p5, %p340_p7  ;;  %s2765_s17 = smov [#allocation5]  }
  0x13   : > { %s3397_s14 = scalar_select %p2883_p4, 1, 0 }
  0x14   : > { %s3398_s15 = scalar_select %p2888_p6, 1, 0 }
  0x15   : > { %s3400_s16 = scalar_select %p2893_p8, 1, 0 }
  0x16   : > { %3399 = sst [smem:[#allocation16_spill]] %s3398_s15  ;;  %s365_s18 = sshll.u32 %s2765_s17, 4  ;;  %s366_s18 = int_to_ptr.vmem [resolvable:$true] %s365_s18 }
  0x17   : > { %p2481_p10 = pneg %p2893_p8  ;;  %s2766_s19 = smov [#allocation7]  }
  0x18   : > { %s376_s20 = sshll.u32 %s2766_s19, 4  ;;  %s2767_s22 = smov [#allocation8]   ;;  %s2906_s20 = int_to_ptr.vmem [resolvable:$true] %s376_s20 }
  0x19   : > { %p2902_p11 = pnand %p2481_p10, %p3388_p1  ;;  %s390_s23 = sshll.u32 %s2767_s22, 4  ;;  %s2908_s23 = int_to_ptr.vmem [resolvable:$true] %s390_s23 }
  0x1a   : > { %s2575_s17 = scalar_lea.hbm %s3376_s5, 16 }
  0x1b   : > { %p2576_p12 = scmp.ne.s32.totalorder %s3376_s5, %s2575_s17  ;;  %p2918_p13 = pneg %p2902_p11 }
  0x1c   : > { %p2582_p5 = scmp.lt.u32.totalorder %s2575_s17, %s3376_s5 }
  0x1d   : > { %p2578_p0 = pnand %p2918_p13, %p2576_p12 }
  0x1f   : > { %p2579_p3 = pneg %p2578_p0 }
  0x21   : > { %p2584_p7 = pnand %p2582_p5, %p2579_p3 }
  0x23   : > { %2587 = shalt.err (!%p2584_p7)
}
  0x24   : > { %s2588_s24 = scalar_lea.vmem %s366_s18, 16  ;;  %s2595_s25 = scalar_lea.vmem %s366_s18, 32 }
  0x25   : > { %p2589_p10 = scmp.ne.s32.totalorder %s366_s18, %s2588_s24  ;;  %p2596_p2 = scmp.lt.s32.totalorder %s366_s18, %s366_s18 }
  0x26   : > { %p2597_p6 = scmp.lt.s32.totalorder %s2595_s25, %s2588_s24 }
  0x27   : > { %p2591_p9 = pnand %p2589_p10, %p2918_p13 }
  0x28   : > { %p2598_p4 = por %p2597_p6, %p2596_p2 }
  0x29   : > { %p2592_p1 = pneg %p2591_p9 }
  0x2b   : > { %p2599_p8 = pnand %p2598_p4, %p2592_p1 }
  0x2d   : > { %2602 = shalt.err (!%p2599_p8)
}
  0x2e   : > { %2484 = dma.hbm_to_vmem [thread:$0]  (!%p2902_p11), %s3376_s5, 16, %s366_s18, [#allocation6]  }
  0x2f   : > { %s2603_s22 = scalar_lea.hbm %s3377_s6, 16 }
  0x30   : > { %p2604_p9 = scmp.ne.s32.totalorder %s3377_s6, %s2603_s22  ;;  %p2610_p1 = scmp.lt.u32.totalorder %s2603_s22, %s3377_s6 }
  0x32   : > { %p2606_p12 = pnand %p2604_p9, %p2918_p13 }
  0x34   : > { %p2607_p2 = pneg %p2606_p12 }
  0x36   : > { %p2612_p4 = pnand %p2610_p1, %p2607_p2 }
  0x38   : > { %2615 = shalt.err (!%p2612_p4)
}
  0x39   : > { %s2616_s18 = scalar_lea.vmem %s2906_s20, 16  ;;  %s2623_s11 = scalar_lea.vmem %s2906_s20, 32 }
  0x3a   : > { %p2617_p6 = scmp.ne.s32.totalorder %s2906_s20, %s2616_s18  ;;  %p2624_p3 = scmp.lt.s32.totalorder %s2906_s20, %s2906_s20 }
  0x3b   : > { %p2625_p5 = scmp.lt.s32.totalorder %s2623_s11, %s2616_s18 }
  0x3c   : > { %p2619_p8 = pnand %p2617_p6, %p2918_p13 }
  0x3d   : > { %p2626_p7 = por %p2625_p5, %p2624_p3 }
  0x3e   : > { %p2620_p0 = pneg %p2619_p8 }
  0x40   : > { %p2627_p10 = pnand %p2626_p7, %p2620_p0 }
  0x42   : > { %2630 = shalt.err (!%p2627_p10)
}
  0x43   : > { %2487 = dma.hbm_to_vmem [thread:$0]  (!%p2902_p11), %s3377_s6, 16, %s2906_s20, [#allocation6]  }
  0x44   : > { %s2631_s17 = scalar_lea.hbm %s3379_s8, 16 }
  0x45   : > { %p2632_p9 = scmp.ne.s32.totalorder %s3379_s8, %s2631_s17  ;;  %p2638_p1 = scmp.lt.u32.totalorder %s2631_s17, %s3379_s8 }
  0x47   : > { %p2634_p12 = pnand %p2632_p9, %p2918_p13 }
  0x49   : > { %p2635_p2 = pneg %p2634_p12 }
  0x4b   : > { %p2640_p4 = pnand %p2638_p1, %p2635_p2 }
  0x4d   : > { %2643 = shalt.err (!%p2640_p4)
}
  0x4e   : > { %s2644_s20 = scalar_lea.vmem %s2908_s23, 16  ;;  %s2651_s11 = scalar_lea.vmem %s2908_s23, 32 }
  0x4f   : > { %p2645_p6 = scmp.ne.s32.totalorder %s2908_s23, %s2644_s20  ;;  %p2652_p3 = scmp.lt.s32.totalorder %s2908_s23, %s2908_s23 }
  0x50   : > { %p2653_p5 = scmp.lt.s32.totalorder %s2651_s11, %s2644_s20 }
  0x51   : > { %p2647_p8 = pnand %p2645_p6, %p2918_p13 }
  0x52   : > { %p2654_p7 = por %p2653_p5, %p2652_p3 }
  0x53   : > { %p2648_p0 = pneg %p2647_p8 }
  0x55   : > { %p2655_p10 = pnand %p2654_p7, %p2648_p0 }
  0x57   : > { %2658 = shalt.err (!%p2655_p10)
}
  0x58   : > { %2490 = dma.hbm_to_vmem [thread:$0]  (!%p2902_p11), %s3379_s8, 16, %s2908_s23, [#allocation9]  }
  0x59   : > { %s2983_s19 = sadd.s32 1, %s2763_s28   ;;  %s38_s30 = sadd.s32 1, %s2759_s27 }
  0x5a   : > { %s35_s21 = ssub.s32 %s2763_s28, %s2983_s19  ;;  %p45_p9 = scmp.ne.s32.totalorder %s2759_s27, %s2755_s26 }
  0x5b   : > { %p36_p13 = scmp.eq.s32.totalorder %s35_s21, 0  ;;  %p46_p12 = scmp.eq.s32.totalorder %s2763_s28, 0 }
  0x5c   : > { %p2502_p2 = scmp.lt.s32.totalorder %s2763_s28, 2  ;;  %p3403_p4 = scmp.eq.s32.totalorder %s2874_s29, 1 }
  0x5d   : > { %s2993_s13 = scalar_select %p36_p13, %s2759_s27, %s38_s30  }
  0x5e   : > { %p47_p1 = por %p46_p12, %p45_p9  ;;  %p2997_p6 = por %p3403_p4, %p45_p9 }
  0x5f   : > { %s413_s22 = sand.u32 1, %s2759_s27   ;;  %s2260_s24 = sshll.u32 %s2763_s28, 7 }
  0x60   : > { %s2259_s23 = sshll.u32 %s413_s22, 3  ;;  %s3405_s0 = sld [smem:[#allocation17_spill]] }
  0x61   : > { %s417_s11 = scalar_lea.vmem [#allocation2], %s2259_s23  ;;  %p3008_p11 = pnand %p2502_p2, %p47_p1 }
  0x62   : > { %s424_s12 = sshll.u32 %s417_s11, 4  ;;  %s414_s21 = scalar_lea.sflag [#allocation3], %s413_s22  ;;  %s3012_s12 = int_to_ptr.vmem [resolvable:$true] %s424_s12 }
  0x63   : > { %p2661_p0 = pneg %p3008_p11 }
  0x66   : > { %s3006_s20 = scalar_lea.hbm %s3405_s0, %s2260_s24  ;;  %s2664_s25 = scalar_lea.hbm %s3405_s0, 256 }
  0x67   : > { %s2659_s30 = scalar_lea.hbm %s3006_s20, 128  ;;  %p2665_p7 = scmp.lt.u32.totalorder %s3006_s20, %s3405_s0 }
  0x68   : > { %p2660_p8 = scmp.ne.s32.totalorder %s3006_s20, %s2659_s30  ;;  %p2666_p10 = scmp.lt.u32.totalorder %s2664_s25, %s2659_s30 }
  0x69   : > { %p2668_p9 = scmp.lt.u32.totalorder %s2659_s30, %s3006_s20 }
  0x6a   : > { %p2662_p3 = pnand %p2661_p0, %p2660_p8  ;;  %p2667_p13 = por %p2666_p10, %p2665_p7 }
  0x6c   : > { %p2663_p5 = pneg %p2662_p3  ;;  %p2669_p12 = por %p2668_p9, %p2667_p13 }
  0x6e   : > { %p2670_p2 = pnand %p2669_p12, %p2663_p5 }
  0x70   : > { %2673 = shalt.err (!%p2670_p2)
}
  0x71   : > { %s2674_s22 = scalar_lea.vmem %s3012_s12, 128  ;;  %s2768_s24 = smov [#allocation2]  }
  0x72   : > { %p2675_p1 = scmp.ne.s32.totalorder %s3012_s12, %s2674_s22  ;;  %s2679_s23 = sshll.u32 %s2768_s24, 4  ;;  %s2680_s23 = int_to_ptr.vmem [resolvable:$false] %s2679_s23 }
  0x73   : > { %s2681_s18 = scalar_lea.vmem %s2680_s23, 256  ;;  %p2682_p3 = scmp.lt.s32.totalorder %s3012_s12, %s2680_s23 }
  0x74   : > { %p2677_p4 = pnand %p2675_p1, %p2661_p0  ;;  %p2683_p7 = scmp.lt.s32.totalorder %s2681_s18, %s2674_s22 }
  0x76   : > { %p2678_p8 = pneg %p2677_p4  ;;  %p2684_p10 = por %p2683_p7, %p2682_p3 }
  0x78   : > { %p2685_p13 = pnand %p2684_p10, %p2678_p8 }
  0x7a   : > { %2688 = shalt.err (!%p2685_p13)
}
  0x7b   : > { %2494 = dma.hbm_to_vmem [thread:$0]  (!%p3008_p11), %s3006_s20, 128, %s3012_s12, %s414_s21  }
  0x7c   : > { %p3407_p5 = scmp.ne.s32.totalorder %s3400_s16, 0 }
  0x7d   : > { %s3042_s30 = sand.u32 (!%p3407_p5), 1, %s2755_s26   ;;  %p3408_p0 = scmp.ne.s32.totalorder (!%p3407_p5), %s3397_s14, 0 }
  0x7e   : > { %433 = sbr.rel (%p3407_p5) target bundleno = 2525 (0x9dd), region = 72  ;;  %s2262_s25 = sshll.u32 (!%p3407_p5), %s3042_s30, 3 }
  0x7f   : > { %s436_s11 = scalar_lea.sflag (!%p3407_p5), [#allocation3], %s3042_s30  ;;  %s439_s22 = scalar_lea.vmem (!%p3407_p5), [#allocation2], %s2262_s25 }
  0x85   : > { %2734 = dma.done.wait (%p3408_p0), %s436_s11, 128  }
  0x86   : > { %2736 = vsyncadd (%p3408_p0), %s436_s11, 4294967168  ;;  %p3409_p11 = scmp.eq.s32.totalorder %s2874_s29, 0 }
  0x88   : > { %2738 = dma.done.wait (%p3409_p11), [#allocation6], 32   ;;  %p3410_p9 = pmov %p3409_p11 }
  0x8a   : > { %2740 = vsyncadd (%p3410_p9), [#allocation6], 4294967264  ;;  %p3411_p12 = pmov %p3410_p9 }
  0x8b   : > { %p3412_p2 = pmov %p3410_p9 }
  0x8c   : > { %2742 = dma.done.wait (%p3411_p12), [#allocation9], 16  }
  0x8d   : > { %2744 = vsyncadd (%p3412_p2), [#allocation9], 4294967280  ;;  %v2769_v0 = vmov 0.0|0.0   ;;  %vm2770_vm0 = vmmov 0   ;;  %v2771_v1 = vmov 0.0   ;;  %s3413_s1 = sld [smem:[#allocation18_spill]]  ;;  %v595_v18 = vlaneseq }
  0x8e   : > { %2435 = vmatprep.subr.bf16.mxu1 %v2769_v0  ;;  %2351 = vmatprep.mubr.msk.f32.mxu1 %vm2770_vm0, %v2771_v1  ;;  %v3079_v8 = vld [vmem:[%s439_s22] sm:$0xff]  ;;  %vm506_vm1 = vcmask 261120   ;;  %s2772_s14 = smov 104   ;;  %s2773_s22 = smov 120   ;;  %v2776_v16 = vmov 1983009808  }
  0x8f   : > { %2364 = vmatprep.subr.mxu0 %v2771_v1  ;;  %2366 = vmatprep.mubr.msk.f32.mxu0 %vm2770_vm0, %v2771_v1  ;;  %v2267_v9 = vld [vmem:[%s3373_s2] ss:$0 sm:$0xff]  ;;  %s2774_s16 = smov 96   ;;  %s2775_s20 = smov 112   ;;  %v593_v17 = vunpack.c.l.s4 %v2776_v16  ;;  %v596_v20 = vshrl.u32 %v595_v18, 7  ;;  %vm1022_vm2 = vcmask 64512  }
  0x90   : > { %v2777_v21 = vmov 1934713408   ;;  %s2778_s12 = smov 64   ;;  %vm1812_vm3 = vcmask 130048   ;;  %vm1814_vm4 = vcmask 195584   ;;  %vm2033_vm5 = vcmask 523264  }
  0x91   : > { %v594_v19 = vunpack.c.0.s8 %v593_v17  ;;  %v625_v22 = vunpack.c.l.s4 %v2777_v21  ;;  %s3415_s15 = sld [smem:[#allocation20_spill]]  ;;  %s2300_s21 = sshll.u32 %s2874_s29, 7 }
  0x92   : > { %s493_s24 = scalar_lea.vmem [#allocation10], %s2262_s25  ;;  %s3416_s0 = sld [smem:[#allocation21_spill]] }
  0x93   : > { %v495_v2 = vld [vmem:[%s3413_s1] sm:$0xff]  ;;  %v496_v3 = vld [vmem:[%s3413_s1 + $0x8] sm:$0xff]  ;;  %v497_v4 = vld [vmem:[%s3413_s1 + $0x10] sm:$0xff]  ;;  %v3108_v25 = vsub.s32 %v594_v19, %v596_v20  ;;  %v626_v28 = vunpack.c.0.s8 %v625_v22  ;;  %s2154_s23 = sshll.u32 %s493_s24, 4  ;;  %s2782_s29 = smov [#allocation10]   ;;  %s3328_s23 = int_to_ptr.vmem [resolvable:$true] %s2154_s23 }
  0x94   : > { %v2436_v5 = vpack.c.bf16 %v496_v3, %v495_v2  ;;  %v498_v6 = vld [vmem:[%s3413_s1 + $0x18] sm:$0xff]  ;;  %s2693_s25 = sshll.u32 %s2782_s29, 4  ;;  %s2694_s25 = int_to_ptr.vmem [resolvable:$false] %s2693_s25 }
  0x95   : > { %v2439_v7 = vpack.c.bf16 %v498_v6, %v497_v4  ;;  %v3118_v33 = vsub.s32 %v626_v28, %v596_v20  ;;  %p2696_p3 = scmp.lt.s32.totalorder %s3328_s23, %s2694_s25 }
  0x96   : > { %2437 = vmatpush3.bf16.msra.mxu1 %v2436_v5 }
  0x97   : > { %2438 = vmatprep.subr.bf16.mxu1 %v2769_v0 }
  0x98   : > { %s3326_s1 = scalar_lea.hbm %s3416_s0, %s2300_s21 }
  0x9a   : > { %2440 = vmatpush3.bf16.msra.mxu1 %v2439_v7 }
  0x9b   : > { %2354 = vmatprep.subr.mxu1 %v2771_v1 }
  0x9d   : > { %2352 = vmatmul.mubr.msk.f32.vlgmr.msra.gmra.mrb[0].mxu1 %vm506_vm1, %v3079_v8 }
  0x9e   : > { %2356 = vmatprep.mubr.msk.f32.mxu1 %vm2770_vm0, %v2771_v1 }
 0x170   : > { %v576_v10 = vpop.f32.mrb[0].mxu1 }
 0x171   : > { %v3089_v11 = vadd.f32 %v2267_v9, %v576_v10  ;;  %v2353_v12 = vpop.f32.mrb[1].mxu1 }
 0x173   : > { %587 = vrot.lane.b32.xlu1 %v3089_v11, %s2772_s14  ;;  %581 = vrot.lane.b32.xlu0 %v3089_v11, %s2773_s22  ;;  %s2141_s14 = scalar_lea.sflag [#allocation4], %s3042_s30  ;;  %s2689_s22 = scalar_lea.vmem %s3328_s23, 128 }
 0x174   : > { %p2690_p1 = scmp.ne.s32.totalorder %s3328_s23, %s2689_s22 }
 0x176   : > { %p2691_p4 = pnand %p2690_p1, %p2997_p6 }
 0x177   : > { %726 = vrot.lane.b32.xlu1 %v3089_v11, %s2774_s16  ;;  %584 = vrot.lane.b32.xlu0 %v3089_v11, %s2775_s20  ;;  %s2780_s20 = smov 8  }
 0x178   : > { %p2692_p8 = pneg %p2691_p4 }
 0x1e5   : > { %v3095_v13 = vpop.permute.xlu0 %581  ;;  %v3098_v14 = vpop.permute.xlu1 %587 }
 0x1e6   : > { %728 = vrot.lane.b32.xlu0 %v3095_v13, %s2774_s16  ;;  %v606_v26 = vcombine.low %v3095_v13, %v3098_v14  ;;  %v607_v27 = vcombine.high %v3095_v13, %v3098_v14 }
 0x1e8   : > { %v614_v31 = vrot.slane %v606_v26, %v3108_v25  ;;  %v621_v32 = vrot.slane %v607_v27, %v3108_v25 }
 0x1e9   : > { %v3100_v15 = vpop.permute.xlu0 %584  ;;  %v727_v34 = vpop.permute.xlu1 %726 }
 0x1ea   : > { %732 = vrot.lane.b32.xlu0 %v3098_v14, %s2774_s16  ;;  %730 = vrot.lane.b32.xlu1 %v3100_v15, %s2774_s16  ;;  %v590_v23 = vcombine.low %v3089_v11, %v3100_v15  ;;  %v591_v24 = vcombine.high %v3089_v11, %v3100_v15  ;;  %s2779_s16 = smov 16  }
 0x1ec   : > { %v598_v29 = vrot.slane %v590_v23, %v3108_v25  ;;  %v605_v30 = vrot.slane %v591_v24, %v3108_v25 }
 0x1ee   : > { %v622_v35 = vcombine.low %v598_v29, %v614_v31  ;;  %v623_v36 = vcombine.high %v598_v29, %v614_v31  ;;  %v638_v37 = vcombine.low %v605_v30, %v621_v32  ;;  %v639_v38 = vcombine.high %v605_v30, %v621_v32 }
 0x1f0   : > { %v630_v40 = vrot.slane %v622_v35, %v3118_v33  ;;  %v637_v41 = vrot.slane %v623_v36, %v3118_v33  ;;  %v646_v42 = vrot.slane %v638_v37, %v3118_v33  ;;  %v653_v43 = vrot.slane %v639_v38, %v3118_v33 }
 0x1f2   : > { %v658_v54 = vcombine.low %v630_v40, %v637_v41  ;;  %v2269_v55 = vcombine.high %v630_v40, %v637_v41  ;;  %v674_v56 = vcombine.low %v646_v42, %v653_v43  ;;  %v2270_v57 = vcombine.high %v646_v42, %v653_v43 }
 0x1f4   : > { %v665_v4 = vrot.slane %v658_v54, %v3108_v25  ;;  %v673_v5 = vrot.slane %v2269_v55, %v3108_v25  ;;  %v681_v6 = vrot.slane %v674_v56, %v3108_v25  ;;  %v689_v7 = vrot.slane %v2270_v57, %v3108_v25 }
 0x1f6   : > { %v690_v21 = vcombine.low %v665_v4, %v673_v5  ;;  %v706_v22 = vcombine.low %v681_v6, %v689_v7  ;;  %v691_v23 = vcombine.high %v665_v4, %v673_v5  ;;  %v707_v24 = vcombine.high %v681_v6, %v689_v7 }
 0x1f8   : > { %v698_v35 = vrot.slane %v690_v21, %v3118_v33  ;;  %v714_v36 = vrot.slane %v706_v22, %v3118_v33  ;;  %v705_v37 = vrot.slane %v691_v23, %v3118_v33  ;;  %v721_v38 = vrot.slane %v707_v24, %v3118_v33 }
 0x1fa   : > { %v722_v41 = vcombine.low %v698_v35, %v714_v36  ;;  %v724_v42 = vcombine.low %v705_v37, %v721_v38 }
 0x258   : > { %v729_v39 = vpop.permute.xlu0 %728 }
 0x25c   : > { %v731_v44 = vpop.permute.xlu1 %730  ;;  %v733_v45 = vpop.permute.xlu0 %732 }
 0x25d   : > { %v738_v46 = vcombine.low %v727_v34, %v731_v44  ;;  %v739_v47 = vcombine.high %v727_v34, %v731_v44  ;;  %v754_v48 = vcombine.low %v729_v39, %v733_v45  ;;  %v755_v49 = vcombine.high %v729_v39, %v733_v45 }
 0x25e   : > { %v723_v44 = vcombine.high %v698_v35, %v714_v36 }
 0x25f   : > { %v746_v50 = vrot.slane %v738_v46, %v3108_v25  ;;  %v753_v51 = vrot.slane %v739_v47, %v3108_v25  ;;  %v762_v52 = vrot.slane %v754_v48, %v3108_v25  ;;  %v769_v53 = vrot.slane %v755_v49, %v3108_v25 }
 0x260   : > { %v725_v46 = vcombine.high %v705_v37, %v721_v38 }
 0x261   : > { %v770_v58 = vcombine.low %v746_v50, %v762_v52  ;;  %v771_v59 = vcombine.high %v746_v50, %v762_v52  ;;  %v786_v60 = vcombine.low %v753_v51, %v769_v53  ;;  %v787_v61 = vcombine.high %v753_v51, %v769_v53 }
 0x263   : > { %v778_v62 = vrot.slane %v770_v58, %v3118_v33  ;;  %v785_v63 = vrot.slane %v771_v59, %v3118_v33  ;;  %v794_v2 = vrot.slane %v786_v60, %v3118_v33  ;;  %v801_v3 = vrot.slane %v787_v61, %v3118_v33 }
 0x265   : > { %v806_v9 = vcombine.low %v778_v62, %v785_v63  ;;  %v2271_v10 = vcombine.high %v778_v62, %v785_v63  ;;  %v822_v12 = vcombine.low %v794_v2, %v801_v3  ;;  %v2272_v16 = vcombine.high %v794_v2, %v801_v3 }
 0x267   : > { %v813_v17 = vrot.slane %v806_v9, %v3108_v25  ;;  %v821_v18 = vrot.slane %v2271_v10, %v3108_v25  ;;  %v829_v19 = vrot.slane %v822_v12, %v3108_v25  ;;  %v837_v20 = vrot.slane %v2272_v16, %v3108_v25 }
 0x269   : > { %v838_v26 = vcombine.low %v813_v17, %v821_v18  ;;  %v854_v27 = vcombine.low %v829_v19, %v837_v20  ;;  %v839_v28 = vcombine.high %v813_v17, %v821_v18  ;;  %v855_v29 = vcombine.high %v829_v19, %v837_v20 }
 0x26b   : > { %v846_v30 = vrot.slane %v838_v26, %v3118_v33  ;;  %v862_v31 = vrot.slane %v854_v27, %v3118_v33  ;;  %v853_v32 = vrot.slane %v839_v28, %v3118_v33  ;;  %v869_v34 = vrot.slane %v855_v29, %v3118_v33 }
 0x26d   : > { %v870_v39 = vcombine.low %v846_v30, %v862_v31  ;;  %v872_v40 = vcombine.low %v853_v32, %v869_v34  ;;  %v871_v43 = vcombine.high %v846_v30, %v862_v31  ;;  %v873_v45 = vcombine.high %v853_v32, %v869_v34 }
 0x26f   : > { %2355 = vmatpush3.xpose.msk.msra.mxu1 %vm1022_vm2, %v870_v39  ;;  %2365 = vmatpush3.xpose.msk.msra.mxu0 %vm1022_vm2, %v872_v40 }
 0x270   : > { %2359 = vmatprep.subr.mxu1 %v2771_v1  ;;  %2374 = vmatprep.subr.mxu0 %v2771_v1 }
 0x272   : > { %2357 = vmatmul.mubr.msk.f32.vlgmr.msra.gmra.mrb[2].mxu1 %vm1022_vm2, %v722_v41  ;;  %2367 = vmatmul.mubr.msk.f32.vlgmr.msra.gmra.mrb[0].mxu0 %vm1022_vm2, %v724_v42 }
 0x273   : > { %2360 = vmatpush3.xpose.msk.msra.mxu1 %vm1022_vm2, %v871_v43  ;;  %2361 = vmatprep.mubr.msk.f32.mxu1 %vm2770_vm0, %v2771_v1 }
 0x274   : > { %2369 = vmatprep.subr.mxu1 %v2771_v1  ;;  %2376 = vmatprep.mubr.msk.f32.mxu0 %vm2770_vm0, %v2771_v1 }
 0x276   : > { %2362 = vmatmul.mubr.msk.f32.vlgmr.msra.gmra.mrb[4].mxu1 %vm1022_vm2, %v723_v44 }
 0x277   : > { %2370 = vmatpush3.xpose.msk.msra.mxu1 %vm1022_vm2, %v873_v45  ;;  %2371 = vmatprep.mubr.msk.f32.mxu1 %vm2770_vm0, %v2771_v1 }
 0x278   : > { %2379 = vmatprep.subr.mxu1 %v2771_v1 }
 0x27a   : > { %2372 = vmatmul.mubr.msk.f32.vlgmr.msra.gmra.mrb[6].mxu1 %vm1022_vm2, %v725_v46 }
 0x27b   : > { %2381 = vmatprep.mubr.msk.f32.mxu1 %vm2770_vm0, %v2771_v1 }
 0x345   : > { %v1095_v47 = vpop.f32.mrb[2].mxu1  ;;  %v1247_v48 = vpop.f32.mrb[0].mxu0 }
 0x346   : > { %v2358_v49 = vpop.f32.mrb[3].mxu1  ;;  %v2368_v50 = vpop.f32.mrb[1].mxu0  ;;  %v1327_v51 = vsel %vm1022_vm2, %v1095_v47, -inf  ;;  %v1333_v57 = vsel %vm1022_vm2, %v1247_v48, -inf }
 0x347   : > { %1328 = vmax.xlane.f32.xlu1 %v1327_v51 }
 0x349   : > { %v1171_v52 = vpop.f32.mrb[4].mxu1 }
 0x34a   : > { %v2363_v53 = vpop.f32.mrb[5].mxu1  ;;  %v1330_v54 = vsel %vm1022_vm2, %v1171_v52, -inf }
 0x34b   : > { %1331 = vmax.xlane.f32.xlu0 %v1330_v54 }
 0x34d   : > { %v1323_v55 = vpop.f32.mrb[6].mxu1 }
 0x34e   : > { %v2373_v56 = vpop.f32.mrb[7].mxu1  ;;  %v1336_v58 = vsel %vm1022_vm2, %v1323_v55, -inf }
 0x34f   : > { %1334 = vmax.xlane.f32.xlu0 %v1333_v57  ;;  %1337 = vmax.xlane.f32.xlu1 %v1336_v58 }
 0x360   : > { %876 = vrot.lane.b32.xlu1 %v3095_v13, %s2778_s12 }
 0x365   : > { %874 = vrot.lane.b32.xlu0 %v3089_v11, %s2778_s12 }
 0x3d4   : > { %v1329_v59 = vpop.xlane.xlu1 %1328 }
 0x3d5   : > { %v1339_v60 = vsub.f32 %v1095_v47, %v1329_v59 }
 0x3d7   : > { %v1343_v61 = vmul.f32 1.442695, %v1339_v60 }
 0x3d8   : > { %v1332_v62 = vpop.xlane.xlu0 %1331 }
 0x3d9   : > { %2555 = vpow2.f32 %v1343_v61  ;;  %v1340_v63 = vsub.f32 %v1171_v52, %v1332_v62 }
 0x3db   : > { %v1345_v2 = vmul.f32 1.442695, %v1340_v63 }
 0x3dc   : > { %v1335_v3 = vpop.xlane.xlu0 %1334  ;;  %v1338_v4 = vpop.xlane.xlu1 %1337 }
 0x3dd   : > { %2557 = vpow2.f32 %v1345_v2  ;;  %v1341_v5 = vsub.f32 %v1247_v48, %v1335_v3  ;;  %v1342_v6 = vsub.f32 %v1323_v55, %v1338_v4 }
 0x3df   : > { %v1347_v7 = vmul.f32 1.442695, %v1341_v5  ;;  %v1349_v9 = vmul.f32 1.442695, %v1342_v6 }
 0x3e0   : > { %v875_v20 = vpop.permute.xlu0 %874  ;;  %v877_v21 = vpop.permute.xlu1 %876 }
 0x3e1   : > { %2559 = vpow2.f32 %v1347_v7 }
 0x3e2   : > { %2561 = vpow2.f32 %v1349_v9 }
 0x3e3   : > { %v3176_v13 = vpop.eup %2555 }
 0x3e4   : > { %v1351_v11 = vsel %vm1022_vm2, %v3176_v13, 0.0 }
 0x3e5   : > { %1352 = vadd.xlane.f32.xlu0 %v1351_v11 }
 0x3e7   : > { %v2558_v10 = vpop.eup %2557 }
 0x3e8   : > { %v1354_v12 = vsel %vm1022_vm2, %v2558_v10, 0.0 }
 0x3e9   : > { %1355 = vadd.xlane.f32.xlu1 %v1354_v12 }
 0x3eb   : > { %v3181_v16 = vpop.eup %2559 }
 0x3ec   : > { %v3183_v17 = vpop.eup %2561  ;;  %v1357_v18 = vsel %vm1022_vm2, %v3181_v16, 0.0 }
 0x3ed   : > { %1358 = vadd.xlane.f32.xlu0 %v1357_v18  ;;  %v1360_v19 = vsel %vm1022_vm2, %v3183_v17, 0.0 }
 0x3ee   : > { %1361 = vadd.xlane.f32.xlu1 %v1360_v19 }
 0x3ff   : > { %878 = vrot.lane.b32.xlu1 %v3100_v15, %s2778_s12 }
 0x403   : > { %880 = vrot.lane.b32.xlu0 %v3098_v14, %s2778_s12  ;;  %s2781_s12 = smov 24  }
 0x472   : > { %v1353_v22 = vpop.xlane.xlu0 %1352 }
 0x473   : > { %2563 = vrcp.f32 %v1353_v22 }
 0x476   : > { %v1356_v23 = vpop.xlane.xlu1 %1355 }
 0x477   : > { %2565 = vrcp.f32 %v1356_v23 }
 0x47a   : > { %v1359_v24 = vpop.xlane.xlu0 %1358 }
 0x47b   : > { %v1362_v26 = vpop.xlane.xlu1 %1361  ;;  %2567 = vrcp.f32 %v1359_v24 }
 0x47c   : > { %2569 = vrcp.f32 %v1362_v26 }
 0x47d   : > { %v2564_v54 = vpop.eup %2563 }
 0x47e   : > { %v881_v27 = vpop.permute.xlu0 %880  ;;  %v1367_v3 = vmul.f32 %v2564_v54, %v3176_v13  ;;  %v1816_v13 = vld [vmem:[%s3374_s3] sm:$0xff] }
 0x47f   : > { %v902_v28 = vcombine.low %v877_v21, %v881_v27  ;;  %v903_v29 = vcombine.high %v877_v21, %v881_v27  ;;  %v879_v30 = vpop.permute.xlu1 %878 }
 0x480   : > { %v886_v31 = vcombine.low %v875_v20, %v879_v30  ;;  %v887_v32 = vcombine.high %v875_v20, %v879_v30 }
 0x481   : > { %v910_v34 = vrot.slane %v902_v28, %v3108_v25  ;;  %v917_v35 = vrot.slane %v903_v29, %v3108_v25  ;;  %v2566_v58 = vpop.eup %2565 }
 0x482   : > { %v894_v15 = vrot.slane %v886_v31, %v3108_v25  ;;  %v901_v14 = vrot.slane %v887_v32, %v3108_v25  ;;  %v1368_v4 = vmul.f32 %v2566_v58, %v2558_v10  ;;  %v1817_v10 = vld [vmem:[%s3374_s3 + $0x8] sm:$0xff] }
 0x483   : > { %v2442_v12 = vpack.c.bf16 %v1817_v10, %v1816_v13 }
 0x484   : > { %v918_v36 = vcombine.low %v894_v15, %v910_v34  ;;  %v919_v37 = vcombine.high %v894_v15, %v910_v34  ;;  %v934_v38 = vcombine.low %v901_v14, %v917_v35  ;;  %v935_v39 = vcombine.high %v901_v14, %v917_v35 }
 0x485   : > { %v2568_v2 = vpop.eup %2567 }
 0x486   : > { %v926_v40 = vrot.slane %v918_v36, %v3118_v33  ;;  %v933_v41 = vrot.slane %v919_v37, %v3118_v33  ;;  %v942_v42 = vrot.slane %v934_v38, %v3118_v33  ;;  %v949_v43 = vrot.slane %v935_v39, %v3118_v33  ;;  %v2570_v5 = vpop.eup %2569  ;;  %v1818_v36 = vld [vmem:[%s3374_s3 + $0x10] sm:$0xff]  ;;  %v1819_v37 = vld [vmem:[%s3374_s3 + $0x18] sm:$0xff] }
 0x487   : > { %v1369_v9 = vmul.f32 %v2568_v2, %v3181_v16  ;;  %v1370_v11 = vmul.f32 %v2570_v5, %v3183_v17 }
 0x488   : > { %v954_v44 = vcombine.low %v926_v40, %v933_v41  ;;  %v2273_v45 = vcombine.high %v926_v40, %v933_v41  ;;  %v970_v46 = vcombine.low %v942_v42, %v949_v43  ;;  %v2274_v47 = vcombine.high %v942_v42, %v949_v43 }
 0x489   : > { %v2445_v42 = vpack.c.bf16 %v1819_v37, %v1818_v36 }
 0x48a   : > { %v961_v48 = vrot.slane %v954_v44, %v3108_v25  ;;  %v969_v49 = vrot.slane %v2273_v45, %v3108_v25  ;;  %v977_v50 = vrot.slane %v970_v46, %v3108_v25  ;;  %v985_v51 = vrot.slane %v2274_v47, %v3108_v25 }
 0x48c   : > { %v986_v52 = vcombine.low %v961_v48, %v969_v49  ;;  %v987_v53 = vcombine.high %v961_v48, %v969_v49  ;;  %v1002_v55 = vcombine.low %v977_v50, %v985_v51  ;;  %v1003_v56 = vcombine.high %v977_v50, %v985_v51 }
 0x48e   : > { %v994_v57 = vrot.slane %v986_v52, %v3118_v33  ;;  %v1010_v59 = vrot.slane %v1002_v55, %v3118_v33  ;;  %v1001_v60 = vrot.slane %v987_v53, %v3118_v33  ;;  %v1017_v61 = vrot.slane %v1003_v56, %v3118_v33 }
 0x490   : > { %v1018_v62 = vcombine.low %v994_v57, %v1010_v59  ;;  %v1019_v63 = vcombine.high %v994_v57, %v1010_v59  ;;  %v1020_v6 = vcombine.low %v1001_v60, %v1017_v61  ;;  %v1021_v7 = vcombine.high %v1001_v60, %v1017_v61 }
 0x492   : > { %2375 = vmatpush3.msra.mxu0 %v1018_v62  ;;  %2380 = vmatpush3.msra.mxu1 %v1019_v63 }
 0x493   : > { %2377 = vmatmul.mubr.msk.f32.vlgmr.msra.gmra.mrb[2].mxu0 %vm1022_vm2, %v1367_v3  ;;  %2382 = vmatmul.mubr.msk.f32.vlgmr.msra.gmra.mrb[8].mxu1 %vm1022_vm2, %v1368_v4 }
 0x494   : > { %2384 = vmatprep.subr.mxu0 %v2771_v1  ;;  %2389 = vmatprep.subr.mxu1 %v2771_v1 }
 0x495   : > { %2385 = vmatpush3.msra.mxu0 %v1020_v6  ;;  %2390 = vmatpush3.msra.mxu1 %v1021_v7 }
 0x496   : > { %2386 = vmatprep.mubr.msk.f32.mxu0 %vm2770_vm0, %v2771_v1  ;;  %2391 = vmatprep.mubr.msk.f32.mxu1 %vm2770_vm0, %v2771_v1 }
 0x497   : > { %2387 = vmatmul.mubr.msk.f32.vlgmr.msra.gmra.mrb[4].mxu0 %vm1022_vm2, %v1369_v9  ;;  %2392 = vmatmul.mubr.msk.f32.vlgmr.msra.gmra.mrb[10].mxu1 %vm1022_vm2, %v1370_v11 }
 0x498   : > { %2441 = vmatprep.subr.bf16.mxu0 %v2769_v0  ;;  %2402 = vmatprep.mubr.msk.f32.mxu0 %vm2770_vm0, %v2771_v1 }
 0x499   : > { %2447 = vmatprep.subr.bf16.mxu1 %v2769_v0  ;;  %2413 = vmatprep.mubr.msk.f32.mxu1 %vm2770_vm0, %v2771_v1 }
 0x49a   : > { %2443 = vmatpush3.bf16.msra.mxu0 %v2442_v12 }
 0x49b   : > { %2444 = vmatprep.subr.bf16.mxu0 %v2769_v0 }
 0x49e   : > { %2446 = vmatpush3.bf16.msra.mxu0 %v2445_v42 }
 0x49f   : > { %2453 = vmatprep.subr.bf16.mxu0 %v2769_v0 }
 0x566   : > { %v1440_v16 = vpop.f32.mrb[2].mxu0  ;;  %v1513_v17 = vpop.f32.mrb[8].mxu1 }
 0x567   : > { %v2378_v18 = vpop.f32.mrb[3].mxu0  ;;  %v2383_v19 = vpop.f32.mrb[9].mxu1 }
 0x568   : > { %v1936_v18 = vld [vmem:[%s3378_s7 + $0x18] sm:$0xff] }
 0x56a   : > { %v1586_v20 = vpop.f32.mrb[4].mxu0  ;;  %v1659_v21 = vpop.f32.mrb[10].mxu1 }
 0x56b   : > { %v1663_v22 = vcombine.low %v1440_v16, %v1586_v20  ;;  %v1664_v23 = vcombine.high %v1440_v16, %v1586_v20  ;;  %v1679_v24 = vcombine.low %v1513_v17, %v1659_v21  ;;  %v1680_v26 = vcombine.high %v1513_v17, %v1659_v21  ;;  %v2388_v27 = vpop.f32.mrb[5].mxu0  ;;  %v2393_v28 = vpop.f32.mrb[11].mxu1  ;;  %v1934_v16 = vld [vmem:[%s3378_s7 + $0x8] sm:$0xff]  ;;  %v2018_v20 = vld [vmem:[%s3380_s9] sm:$0xff] }
 0x56c   : > { %v2019_v21 = vld [vmem:[%s3380_s9 + $0x8] sm:$0xff]  ;;  %v2022_v27 = vld [vmem:[%s3380_s9 + $0x20] sm:$0xff] }
 0x56d   : > { %v1671_v29 = vrot.slane %v1663_v22, %v3108_v25  ;;  %v1678_v30 = vrot.slane %v1664_v23, %v3108_v25  ;;  %v1687_v31 = vrot.slane %v1679_v24, %v3108_v25  ;;  %v1694_v32 = vrot.slane %v1680_v26, %v3108_v25  ;;  %v2020_v22 = vld [vmem:[%s3380_s9 + $0x10] sm:$0xff]  ;;  %v2021_v24 = vld [vmem:[%s3380_s9 + $0x18] sm:$0xff]  ;;  %v2023_v28 = vld [vmem:[%s3380_s9 + $0x28] sm:$0xff] }
 0x56e   : > { %v2454_v23 = vpack.c.bf16 %v2019_v21, %v2018_v20  ;;  %v2457_v26 = vpack.c.bf16 %v2021_v24, %v2020_v22 }
 0x56f   : > { %v1695_v34 = vcombine.low %v1671_v29, %v1687_v31  ;;  %v1696_v35 = vcombine.high %v1671_v29, %v1687_v31  ;;  %v1711_v15 = vcombine.low %v1678_v30, %v1694_v32  ;;  %v1712_v14 = vcombine.high %v1678_v30, %v1694_v32 }
 0x570   : > { %v2460_v29 = vpack.c.bf16 %v2023_v28, %v2022_v27 }
 0x571   : > { %v1703_v38 = vrot.slane %v1695_v34, %v3118_v33  ;;  %v1710_v39 = vrot.slane %v1696_v35, %v3118_v33  ;;  %v1719_v40 = vrot.slane %v1711_v15, %v3118_v33  ;;  %v1726_v41 = vrot.slane %v1712_v14, %v3118_v33 }
 0x573   : > { %v1731_v43 = vcombine.low %v1703_v38, %v1710_v39  ;;  %v2287_v44 = vcombine.high %v1703_v38, %v1710_v39  ;;  %v1747_v45 = vcombine.low %v1719_v40, %v1726_v41  ;;  %v2288_v46 = vcombine.high %v1719_v40, %v1726_v41  ;;  %v2291_v38 = vld [vmem:[#allocation5] ss:$0 sm:$0xff]  ;;  %v2292_v40 = vld [vmem:[#allocation7] ss:$0 sm:$0xff] }
 0x575   : > { %v1738_v47 = vrot.slane %v1731_v43, %v3108_v25  ;;  %v1746_v48 = vrot.slane %v2287_v44, %v3108_v25  ;;  %v1754_v49 = vrot.slane %v1747_v45, %v3108_v25  ;;  %v1762_v50 = vrot.slane %v2288_v46, %v3108_v25  ;;  %v2025_v43 = vld [vmem:[%s3380_s9 + $0x38] sm:$0xff]  ;;  %v2293_v45 = vld [vmem:[#allocation8] ss:$0 sm:$0xff] }
 0x577   : > { %v1764_v51 = vcombine.high %v1738_v47, %v1746_v48  ;;  %v1780_v52 = vcombine.high %v1754_v49, %v1762_v50  ;;  %v1763_v53 = vcombine.low %v1738_v47, %v1746_v48  ;;  %v1779_v54 = vcombine.low %v1754_v49, %v1762_v50  ;;  %v2295_v50 = vld [vmem:[%s3381_s10] ss:$0 sm:$0xff] }
 0x579   : > { %v1778_v55 = vrot.slane %v1764_v51, %v3118_v33  ;;  %v1794_v56 = vrot.slane %v1780_v52, %v3118_v33  ;;  %v1771_v57 = vrot.slane %v1763_v53, %v3118_v33  ;;  %v1787_v58 = vrot.slane %v1779_v54, %v3118_v33  ;;  %v2289_v33 = vld [vmem:[%s3375_s4] ss:$0 sm:$0xff] }
 0x57b   : > { %v1797_v59 = vcombine.low %v1778_v55, %v1794_v56  ;;  %v1796_v60 = vcombine.high %v1771_v57, %v1787_v58  ;;  %v1798_v61 = vcombine.high %v1778_v55, %v1794_v56  ;;  %v1795_v62 = vcombine.low %v1771_v57, %v1787_v58 }
 0x57d   : > { %1804 = vrot.lane.b32.xlu0 %v1797_v59, %s2779_s16  ;;  %1800 = vrot.lane.b32.xlu1 %v1796_v60, %s2780_s20  ;;  %s3414_s16 = sld [smem:[#allocation19_spill]] }
 0x581   : > { %1808 = vrot.lane.b32.xlu1 %v1798_v61, %s2781_s12 }
 0x5ef   : > { %v1801_v25 = vpop.permute.xlu1 %1800  ;;  %v1805_v63 = vpop.permute.xlu0 %1804 }
 0x5f0   : > { %v1811_v2 = vsel %vm1022_vm2, %v1795_v62, %v1801_v25 }
 0x5f1   : > { %v1813_v4 = vsel %vm1812_vm3, %v1811_v2, %v1805_v63 }
 0x5f3   : > { %v1809_v3 = vpop.permute.xlu1 %1808 }
 0x5f4   : > { %v1815_v5 = vsel %vm1814_vm4, %v1813_v4, %v1809_v3  ;;  %v2297_v4 = vld [vmem:[%s3414_s16] ss:$0 sm:$0xff]  ;;  %s2695_s16 = scalar_lea.vmem %s2694_s25, 256 }
 0x5f5   : > { %2403 = vmatmul.mubr.msk.f32.vlgmr.msra.gmra.mrb[6].mxu0 %vm506_vm1, %v1815_v5  ;;  %p2697_p7 = scmp.lt.s32.totalorder %s2695_s16, %s2689_s22 }
 0x5f6   : > { %2432 = vmatprep.mubr.msk.f32.mxu0 %vm2770_vm0, %v2771_v1  ;;  %v1933_v1 = vld [vmem:[%s3378_s7] sm:$0xff]  ;;  %2455 = vmatpush3.bf16.msra.mxu0 %v2454_v23 }
 0x5f7   : > { %v2448_v17 = vpack.c.bf16 %v1934_v16, %v1933_v1  ;;  %2456 = vmatprep.subr.bf16.mxu0 %v2769_v0  ;;  %p2698_p10 = por %p2697_p7, %p2696_p3 }
 0x5f9   : > { %2449 = vmatpush3.bf16.msra.mxu1 %v2448_v17  ;;  %p2699_p13 = pnand %p2698_p10, %p2692_p8 }
 0x5fa   : > { %2450 = vmatprep.subr.bf16.mxu1 %v2769_v0  ;;  %2458 = vmatpush3.bf16.msra.mxu0 %v2457_v26 }
 0x5fb   : > { %2459 = vmatprep.subr.bf16.mxu0 %v2769_v0 }
 0x5fe   : > { %2461 = vmatpush3.bf16.msra.mxu0 %v2460_v29 }
 0x5ff   : > { %2462 = vmatprep.subr.bf16.mxu0 %v2769_v0  ;;  %v2024_v0 = vld [vmem:[%s3380_s9 + $0x30] sm:$0xff] }
 0x600   : > { %v2463_v44 = vpack.c.bf16 %v2025_v43, %v2024_v0 }
 0x602   : > { %2464 = vmatpush3.bf16.msra.mxu0 %v2463_v44 }
 0x6c8   : > { %v1896_v6 = vpop.f32.mrb[6].mxu0 }
 0x6c9   : > { %v1897_v7 = vadd.f32 %v2289_v33, %v1896_v6  ;;  %v2404_v9 = vpop.f32.mrb[7].mxu0  ;;  %v2298_v33 = vld [vmem:[%s3415_s15] ss:$0 sm:$0xff] }
 0x6cb   : > { %v1900_v11 = vadd.f32 %v1897_v7, %v3079_v8  ;;  %v1935_v8 = vld [vmem:[%s3378_s7 + $0x10] sm:$0xff] }
 0x6cc   : > { %v2451_v19 = vpack.c.bf16 %v1936_v18, %v1935_v8 }
 0x6cd   : > { %v1901_v13 = vsel %vm506_vm1, %v1900_v11, 0.0  ;;  %v1906_v10 = vmul.f32 %v1900_v11, %v1900_v11 }
 0x6ce   : > { %1902 = vadd.xlane.f32.xlu0 %v1901_v13  ;;  %2452 = vmatpush3.bf16.msra.mxu1 %v2451_v19 }
 0x6cf   : > { %v1907_v12 = vsel %vm506_vm1, %v1906_v10, 0.0 }
 0x6d0   : > { %1908 = vadd.xlane.f32.xlu1 %v1907_v12 }
 0x75b   : > { %v1903_v30 = vpop.xlane.xlu0 %1902 }
 0x75c   : > { %v1905_v31 = vmul.f32 0.03125, %v1903_v30 }
 0x75d   : > { %v1909_v32 = vpop.xlane.xlu1 %1908 }
 0x75e   : > { %v1911_v34 = vmul.f32 %v1905_v31, %v1905_v31  ;;  %v1910_v35 = vmul.f32 0.03125, %v1909_v32  ;;  %v1913_v36 = vsub.f32 %v1900_v11, %v1905_v31 }
 0x760   : > { %v1912_v15 = vsub.f32 %v1910_v35, %v1911_v34 }
 0x762   : > { %v1914_v14 = vadd.f32 1e-05, %v1912_v15 }
 0x764   : > { %2571 = vrsqrt.f32 %v1914_v14 }
 0x76e   : > { %v2572_v37 = vpop.eup %2571 }
 0x76f   : > { %v1916_v39 = vmul.f32 %v2572_v37, %v1913_v36 }
 0x771   : > { %v1924_v41 = vmul.f32 %v2291_v38, %v1916_v39 }
 0x773   : > { %v1932_v42 = vadd.f32 %v2292_v40, %v1924_v41 }
 0x775   : > { %2414 = vmatmul.mubr.msk.f32.vlgmr.msra.gmra.mrb[12].mxu1 %vm506_vm1, %v1932_v42 }
 0x848   : > { %v2013_v46 = vpop.f32.mrb[12].mxu1 }
 0x849   : > { %v2014_v47 = vadd.f32 %v2293_v45, %v2013_v46  ;;  %v2415_v48 = vpop.f32.mrb[13].mxu1 }
 0x84b   : > { %v2017_v49 = vmax.f32 %v2014_v47, 0.0 }
 0x84d   : > { %2433 = vmatmul.mubr.msk.f32.vlgmr.msra.gmra.mrb[8].mxu0 %vm2033_vm5, %v2017_v49 }
 0x920   : > { %v2103_v51 = vpop.f32.mrb[8].mxu0 }
 0x921   : > { %v2104_v52 = vadd.f32 %v2295_v50, %v2103_v51  ;;  %v2434_v53 = vpop.f32.mrb[9].mxu0 }
 0x923   : > { %v2107_v54 = vadd.f32 %v2104_v52, %v1932_v42 }
 0x925   : > { %v2108_v55 = vsel %vm506_vm1, %v2107_v54, 0.0  ;;  %v2112_v56 = vmul.f32 %v2107_v54, %v2107_v54 }
 0x926   : > { %2109 = vadd.xlane.f32.xlu0 %v2108_v55 }
 0x927   : > { %v2113_v57 = vsel %vm506_vm1, %v2112_v56, 0.0 }
 0x92a   : > { %2114 = vadd.xlane.f32.xlu0 %v2113_v57 }
 0x9b3   : > { %v2110_v58 = vpop.xlane.xlu0 %2109 }
 0x9b4   : > { %v2111_v59 = vmul.f32 0.03125, %v2110_v58 }
 0x9b6   : > { %v2117_v61 = vmul.f32 %v2111_v59, %v2111_v59  ;;  %v2119_v2 = vsub.f32 %v2107_v54, %v2111_v59 }
 0x9b7   : > { %v2115_v60 = vpop.xlane.xlu0 %2114 }
 0x9b8   : > { %v2116_v62 = vmul.f32 0.03125, %v2115_v60 }
 0x9ba   : > { %v2118_v25 = vsub.f32 %v2116_v62, %v2117_v61 }
 0x9bc   : > { %v2120_v63 = vadd.f32 1e-05, %v2118_v25 }
 0x9be   : > { %2573 = vrsqrt.f32 %v2120_v63 }
 0x9c8   : > { %v2574_v3 = vpop.eup %2573 }
 0x9c9   : > { %v2122_v5 = vmul.f32 %v2574_v3, %v2119_v2 }
 0x9cb   : > { %v2130_v6 = vmul.f32 %v2297_v4, %v2122_v5 }
 0x9cd   : > { %v2138_v7 = vadd.f32 %v2298_v33, %v2130_v6 }
 0x9cf   : > { %2139 = vst.msk [vmem:[%s493_s24] sm:$0xff] %vm506_vm1, %v2138_v7 }
 0x9d0   : > { %2702 = shalt.err (!%p2699_p13)
}
 0x9d1   : > { %s2703_s30 = scalar_lea.hbm %s3326_s1, 128  ;;  %s2707_s15 = scalar_lea.hbm %s3416_s0, 256 }
 0x9d2   : > { %p2704_p5 = scmp.ne.s32.totalorder %s3326_s1, %s2703_s30  ;;  %p2708_p9 = scmp.lt.u32.totalorder %s3326_s1, %s3416_s0 }
 0x9d3   : > { %p2709_p12 = scmp.lt.u32.totalorder %s2707_s15, %s2703_s30  ;;  %p2711_p1 = scmp.lt.u32.totalorder %s2703_s30, %s3326_s1 }
 0x9d4   : > { %p2705_p0 = pnand %p2704_p5, %p2997_p6 }
 0x9d5   : > { %p2710_p2 = por %p2709_p12, %p2708_p9 }
 0x9d6   : > { %p2706_p11 = pneg %p2705_p0 }
 0x9d7   : > { %p2712_p4 = por %p2711_p1, %p2710_p2 }
 0x9d9   : > { %p2713_p8 = pnand %p2712_p4, %p2706_p11 }
 0x9db   : > { %2716 = shalt.err (!%p2713_p8)
}
 0x9dc   : > { %2479 = dma.vmem_to_hbm [thread:$0]  (%p2997_p6), %s3328_s23, 128, %s3326_s1, %s2141_s14  }
 0x9dd PF: > { %s3417_s18 = sld [smem:[#allocation15_spill]]  ;;  %s3418_s11 = sld [smem:[#allocation16_spill]] }
 0x9de   : > { %p3420_p7 = scmp.ge.s32.totalorder %s2763_s28, 2 }
 0x9e3   : > { %s2166_s22 = sand.u32 1, %s3417_s18   ;;  %p3419_p3 = scmp.ne.s32.totalorder %s3418_s11, 0 }
 0x9e4   : > { %s2167_s29 = scalar_lea.sflag [#allocation4], %s2166_s22 }
 0x9e5   : > { %p2496_p10 = pnand %p3420_p7, %p3419_p3 }
 0x9e7   : > { %2746 = dma.done.wait (!%p2496_p10), %s2167_s29, 128  }
 0x9e8   : > { %2748 = vsyncadd (!%p2496_p10), %s2167_s29, 4294967168  ;;  %p28_p13 = scmp.ge.s32.totalorder %s2983_s19, 4   ;;  %s3421_s25 = smov %s2755_s26 }
 0x9e9   : > { %s3422_s26 = smov %s2759_s27  ;;  %s3423_s27 = smov %s2993_s13 }
 0x9ea   : > { %s3424_s28 = smov %s2983_s19  ;;  %30 = sbr.rel (!%p28_p13) target bundleno = 13 (0xd), region = 129 }
 0x9f1   :  { %2172 = vsyncpa [#allocation3], 1 }
 0x9f2   :  { %2174 = vsyncpa [#allocation3 + $0x1], 1 }
 0x9f3   :  { %2175 = vsyncpa [#allocation6], 1 }
 0x9f4   :  { %2176 = vsyncpa [#allocation9], 1 }
 0x9f5   :  { %2177 = vsyncpa [#allocation4], 1 }
 0x9f6   :  { %2179 = vsyncpa [#allocation4 + $0x1], 1 }

</bundles_post_ra>
